<compile_context>
chip_gen: v7x
topology: tpu7x:2x2x1
jax: 0.10.0
libtpu: 0.0.40
codegen_flags: <defaults>
</compile_context>

<pallas_src>
import functools

import jax
import jax.numpy as jnp
from jax.experimental import pallas as pl
from jax.experimental.pallas import tpu as pltpu

_LANE = 128
_SUBLANE = 8
# ~2 MiB per block: in + out, each double-buffered => ~8 MiB VMEM footprint.
_BLOCK_BYTES = 2 * 1024 * 1024
# Candidate slab widths, widest (most lane-dense) first.
_LANE_WIDTHS = (4096, 2048, 1024, 512, 256, 128)

_INV_SQRT2 = 0.7071067811865476


def _erf(x):
    """float32 erf via Abramowitz & Stegun 7.1.26 (max abs err ~1.5e-7).

    Built only from exp/mul/add/where so it always lowers on Mosaic (no
    reliance on an erf primitive lowering).
    """
    a1, a2, a3, a4, a5 = 0.254829592, -0.284496736, 1.421413741, -1.453152027, 1.061405429
    p = 0.3275911
    ax = jnp.abs(x)
    t = 1.0 / (1.0 + p * ax)
    poly = ((((a5 * t + a4) * t + a3) * t + a2) * t + a1) * t
    y = 1.0 - poly * jnp.exp(-ax * ax)
    return jnp.where(x >= 0.0, y, -y)


def _expm1(x):
    """Accurate expm1 (Kahan trick) from exp/log/where only.

    Avoids catastrophic cancellation of exp(x)-1 for small |x| without relying
    on an expm1 primitive lowering.
    """
    u = jnp.exp(x)
    return jnp.where(u == 1.0, x, (u - 1.0) * x / jnp.log(u))


# Elementwise activation definitions matching PyTorch nn.modules.activation
# default-argument semantics.
_ACT_FNS = {
    "ReLU": lambda x: jnp.maximum(x, 0.0),
    "ReLU6": lambda x: jnp.clip(x, 0.0, 6.0),
    "Sigmoid": lambda x: 1.0 / (1.0 + jnp.exp(-x)),
    "Tanh": jnp.tanh,
    "SiLU": lambda x: x * (1.0 / (1.0 + jnp.exp(-x))),
    # PyTorch nn.GELU default is approximate='none' -> exact erf form.
    "GELU": lambda x: 0.5 * x * (1.0 + _erf(x * _INV_SQRT2)),
    "LeakyReLU": lambda x: jnp.where(x >= 0.0, x, 0.01 * x),
    "Hardtanh": lambda x: jnp.clip(x, -1.0, 1.0),
    "ELU": lambda x: jnp.where(x > 0.0, x, _expm1(jnp.minimum(x, 0.0))),
}
# TODO(synk): parameterized / stateful activations (PReLU learnable weight,
# RReLU randomness, MultiheadAttention, Softmax dim arg, ...) are not wired up.

# Activations that are exact in the input dtype (no transcendentals): skip the
# f32 upcast so bf16 inputs stay packed (native bf16 VPU path on v6e/v7x).
_NATIVE_DTYPE_OK = frozenset({"ReLU", "ReLU6", "LeakyReLU", "Hardtanh"})


def _act_kernel(x_ref, o_ref, *, act_fn, upcast):
    x = x_ref[...]
    if upcast:
        x = x.astype(jnp.float32)
    o_ref[...] = act_fn(x).astype(o_ref.dtype)


def activation_pallas(x, activation: str):
    """Apply `activation` elementwise to x via a Pallas TPU kernel."""
    if activation not in _ACT_FNS:
        raise ValueError(f"Activation: {activation} is not a valid activation function")
    act_fn = _ACT_FNS[activation]
    upcast = activation not in _NATIVE_DTYPE_OK

    orig_shape = x.shape
    dtype = x.dtype
    n = x.size
    if n == 0:
        return x

    flat = x.reshape(-1)

    # Lane-dense slab: pick the widest last dim that divides n exactly so the
    # common case needs NO padding copy. Ragged sizes fall back to a 128-wide
    # slab padded to one vreg multiple (small extra copy, rare path).
    lane_w = None
    for cand in _LANE_WIDTHS:
        if n % (_SUBLANE * cand) == 0:
            lane_w = cand
            break
    if lane_w is None:
        lane_w = _LANE
        pad = (-n) % (_SUBLANE * lane_w)
        flat = jnp.concatenate([flat, jnp.zeros((pad,), dtype=dtype)])
    rows = flat.size // lane_w
    slab = flat.reshape(rows, lane_w)

    # Block rows: ~_BLOCK_BYTES per block, sublane-aligned, capped at the slab.
    block_rows = (_BLOCK_BYTES // (lane_w * dtype.itemsize)) // _SUBLANE * _SUBLANE
    block_rows = max(_SUBLANE, min(block_rows, rows))
    grid = (pl.cdiv(rows, block_rows),)

    kernel = functools.partial(_act_kernel, act_fn=act_fn, upcast=upcast)

    out = pl.pallas_call(
        kernel,
        out_shape=jax.ShapeDtypeStruct((rows, lane_w), dtype),
        grid_spec=pltpu.PrefetchScalarGridSpec(
            num_scalar_prefetch=0,
            grid=grid,
            in_specs=[pl.BlockSpec((block_rows, lane_w), lambda i: (i, 0))],
            out_specs=pl.BlockSpec((block_rows, lane_w), lambda i: (i, 0)),
        ),
        # The single grid axis is embarrassingly parallel -> shards across both
        # TensorCores on v7x; neutral on v5e/v6e (1 TC).
        compiler_params=pltpu.CompilerParams(dimension_semantics=("parallel",)),
        # NOTE: input_output_aliases={0: 0} would drop the extra HBM output
        # allocation, but callers here reuse `x`, so XLA would insert a copy
        # anyway; leaving it off avoids that hidden extra pass.
    )(slab)

    out_flat = out.reshape(-1)
    if out_flat.size != n:
        out_flat = out_flat[:n]
    return out_flat.reshape(orig_shape)


def _reference(x, activation):
    # Pure-JAX reference for validation (matches PyTorch defaults).
    refs = {
        "ReLU": lambda x: jnp.maximum(x, 0.0),
        "ReLU6": lambda x: jnp.clip(x, 0.0, 6.0),
        "Sigmoid": jax.nn.sigmoid,
        "Tanh": jnp.tanh,
        "SiLU": jax.nn.silu,
        "GELU": lambda x: jax.nn.gelu(x, approximate=False),
        "LeakyReLU": lambda x: jnp.where(x >= 0.0, x, 0.01 * x),
        "Hardtanh": lambda x: jnp.clip(x, -1.0, 1.0),
        "ELU": lambda x: jnp.where(x > 0.0, x, jnp.expm1(jnp.minimum(x, 0.0))),
    }
    return refs[activation](x)


if __name__ == "__main__":
    key = jax.random.PRNGKey(0)
    k1, k2 = jax.random.split(key)
    # Small NCHW conv-style input (exercises the no-padding fast path).
    x_main = jax.random.normal(k1, (2, 4, 16, 16), dtype=jnp.float32)
    # Ragged-sized input (exercises the padded fallback path).
    x_ragged = jax.random.normal(k2, (3, 5, 7, 11), dtype=jnp.float32)

    names = ["ReLU", "ReLU6", "GELU", "SiLU", "Tanh", "Sigmoid",
             "LeakyReLU", "Hardtanh", "ELU"]

    ok = True
    for xin in (x_main, x_ragged):
        for name in names:
            y = jax.block_until_ready(activation_pallas(xin, name))
            y_ref = _reference(xin, name)
            if y.shape != xin.shape or y.dtype != xin.dtype:
                ok = False
                break
            if not bool(jnp.allclose(y, y_ref, atol=1e-5, rtol=1e-5)):
                ok = False
                break
        if not ok:
            break

    print("KERNEL_OK" if ok else "KERNEL_MISMATCH")
</pallas_src>

<mosaic_0001>
module attributes {stable_mosaic.version = 11 : i64} {
  func.func @_act_kernel(%arg0: i32, %arg1: memref<8x256xf32, #tpu.memory_space<vmem>>, %arg2: memref<8x256xf32, #tpu.memory_space<vmem>>) attributes {dimension_semantics = [#tpu.dimension_semantics<parallel>], iteration_bounds = array<i64: 1>, scalar_prefetch = 0 : i64, scratch_operands = 0 : i64, tpu.core_type = #tpu.core_type<tc>, window_params = [{transform_indices = @transform_0, window_bounds = array<i64: 8, 256>}, {transform_indices = @transform_1, window_bounds = array<i64: 8, 256>}]} {
    %c0 = arith.constant 0 : index
    %c0_0 = arith.constant 0 : index
    %0 = vector.load %arg1[%c0, %c0_0] : memref<8x256xf32, #tpu.memory_space<vmem>>, vector<8x256xf32>
    %cst = arith.constant 0.000000e+00 : f32
    %1 = vector.broadcast %cst : f32 to vector<8x256xf32>
    %2 = arith.maximumf %0, %1 : vector<8x256xf32>
    %c0_1 = arith.constant 0 : index
    %c0_2 = arith.constant 0 : index
    %3 = vector.load %arg2[%c0_1, %c0_2] : memref<8x256xf32, #tpu.memory_space<vmem>>, vector<8x256xf32>
    tpu.vector_store %arg2[%c0_1, %c0_2], %2 {strides = array<i32>} : memref<8x256xf32, #tpu.memory_space<vmem>>, vector<8x256xf32>,
    return
  }
  func.func @transform_0(%arg0: i32) -> (i32, i32) {
    %c0_i32 = arith.constant 0 : i32
    %c0_i32_0 = arith.constant 0 : i32
    return %arg0, %c0_i32 : i32, i32
  }
  func.func @transform_1(%arg0: i32) -> (i32, i32) {
    %c0_i32 = arith.constant 0 : i32
    %c0_i32_0 = arith.constant 0 : i32
    return %arg0, %c0_i32 : i32, i32
  }
}

</mosaic_0001>

<bundles_post_ra>
// kernel: tpu_custom_call.1
= control target key start
LH: loop header
LB: loop body
LE: loop exit
PB: predicated region body
PF: predicated region fallthrough
CT: control target
= control target key end

     0   :  { %6 = vsyncpa [#allocation3], 0  ;;  %s128_s0 = inlined_call_operand.hbm [shape: f32[8,256], index: 0, kind: input, shape index: {}]   ;;  %s129_s1 = inlined_call_operand.hbm [shape: f32[8,256], index: 1, kind: output, shape index: {}]  }
   0x1   :  { %7 = vsyncpa [#allocation4], 0  ;;  %s92_s6 = smov [#allocation2]   ;;  %s44_s10 = scalar_lea.hbm %s128_s0, 256 }
   0x2   :  { %s14_s7 = sshll.u32 %s92_s6, 4  ;;  %p45_p0 = scmp.ne.s32.totalorder %s128_s0, %s44_s10  ;;  %s15_s7 = int_to_ptr.vmem [resolvable:$true] %s14_s7 }
   0x3   :  { %p48_p1 = scmp.lt.u32.totalorder %s44_s10, %s128_s0 }
   0x5   :  { %p50_p2 = pnand %p48_p1, %p45_p0 }
   0x7   :  { %53 = shalt.err (!%p50_p2)
}
   0x8   :  { %s54_s15 = scalar_lea.vmem %s15_s7, 256  ;;  %p59_p4 = scmp.lt.s32.totalorder %s15_s7, %s15_s7 }
   0x9   :  { %p55_p3 = scmp.ne.s32.totalorder %s15_s7, %s54_s15  ;;  %p60_p5 = scmp.lt.s32.totalorder %s54_s15, %s54_s15 }
   0xb   :  { %p61_p6 = por %p60_p5, %p59_p4 }
   0xd   :  { %p62_p7 = pnand %p61_p6, %p55_p3 }
   0xf   :  { %65 = shalt.err (!%p62_p7)
}
  0x10   :  { %17 = dma.hbm_to_vmem [thread:$0]  %s128_s0, 256, %s15_s7, [#allocation3]  }
  0x11   :  { %88 = dma.done.wait [#allocation3], 256  }
  0x12   :  { %89 = vsyncadd [#allocation3], 4294967040  ;;  %s93_s18 = smov [#allocation5]   ;;  %v21_v0 = vld [vmem:[#allocation2] sm:$0xff]  ;;  %v22_v1 = vld [vmem:[#allocation2 + $0x8] sm:$0xff] }
  0x13   :  { %s33_s19 = sshll.u32 %s93_s18, 4  ;;  %v23_v2 = vmax.f32 %v21_v0, 0.0  ;;  %v24_v3 = vmax.f32 %v22_v1, 0.0  ;;  %s34_s19 = int_to_ptr.vmem [resolvable:$true] %s33_s19 }
  0x14   :  { %s66_s20 = scalar_lea.vmem %s34_s19, 256  ;;  %p71_p9 = scmp.lt.s32.totalorder %s34_s19, %s34_s19 }
  0x15   :  { %25 = vst [vmem:[#allocation5] sm:$0xff] %v23_v2  ;;  %26 = vst [vmem:[#allocation5 + $0x8] sm:$0xff] %v24_v3  ;;  %p67_p8 = scmp.ne.s32.totalorder %s34_s19, %s66_s20  ;;  %p72_p10 = scmp.lt.s32.totalorder %s66_s20, %s66_s20 }
  0x17   :  { %p73_p11 = por %p72_p10, %p71_p9 }
  0x19   :  { %p74_p12 = pnand %p73_p11, %p67_p8 }
  0x1b   :  { %77 = shalt.err (!%p74_p12)
}
  0x1c   :  { %s78_s22 = scalar_lea.hbm %s129_s1, 256 }
  0x1d   :  { %p79_p13 = scmp.ne.s32.totalorder %s129_s1, %s78_s22  ;;  %p82_p0 = scmp.lt.u32.totalorder %s78_s22, %s129_s1 }
  0x1f   :  { %p84_p1 = pnand %p82_p0, %p79_p13 }
  0x21   :  { %87 = shalt.err (!%p84_p1)
}
  0x22   :  { %36 = dma.vmem_to_hbm [thread:$0]  %s34_s19, 256, %s129_s1, [#allocation4]  }
  0x23   :  { %90 = dma.done.wait [#allocation4], 256  }
  0x24   :  { %91 = vsyncadd [#allocation4], 4294967040 }
  0x25   :  { %40 = vsyncpa [#allocation3], 1 }
  0x26   :  { %41 = vsyncpa [#allocation4], 1 }

</bundles_post_ra>
